<compile_context>
chip_gen: v7x
topology: tpu7x:2x2x1
jax: 0.10.0
libtpu: 0.0.40
codegen_flags: <defaults>
</compile_context>

<pallas_src>
import functools

import jax
import jax.numpy as jnp
from jax.experimental import pallas as pl
from jax.experimental.pallas import tpu as pltpu

_LANE = 128
_SUBLANE = 8


def _round_up(x, m):
    return (x + m - 1) // m * m


def dnn_kernel(nout, x_ref, w0_ref, b0_ref, w1_ref, b1_ref, w2_ref, b2_ref,
               out_ref, acc_ref):
    k = pl.program_id(1)
    nk = pl.num_programs(1)

    @pl.when(k == 0)
    def _():
        acc_ref[...] = jnp.zeros_like(acc_ref)

    # Layer 0 partial product: accumulate x[:, k-tile] @ W0[k-tile, :] in f32.
    acc_ref[...] += jnp.dot(
        x_ref[...].astype(w0_ref.dtype), w0_ref[...],
        preferred_element_type=jnp.float32)

    @pl.when(k == nk - 1)
    def _():
        # Layer 0 finalize: bias + sigmoid.
        h0 = jax.nn.sigmoid(acc_ref[...] + b0_ref[...])
        # Layer 1: Linear(400->50) + sigmoid (padded to 512->128; padded rows
        # of W1 are zero, so the padded-lane sigmoid(0)=0.5 values in h0
        # contribute nothing).
        h1 = jax.nn.sigmoid(
            jnp.dot(h0, w1_ref[...], preferred_element_type=jnp.float32)
            + b1_ref[...])
        # Layer 2: Linear(50->nout) into a lane-dense (128-wide) slab.
        logits = (jnp.dot(h1, w2_ref[...], preferred_element_type=jnp.float32)
                  + b2_ref[...])
        # Mask padded output lanes so the softmax only sees the real nout.
        lane = jax.lax.broadcasted_iota(jnp.int32, logits.shape, 1)
        logits = jnp.where(lane < nout, logits, -1e30)
        m = jnp.max(logits, axis=-1, keepdims=True)
        e = jnp.exp(logits - m)
        denom = jnp.sum(e, axis=-1, keepdims=True)
        # Exact division (not approx reciprocal) so softmax rows sum to 1.
        out_ref[...] = e / denom


def init_params(key, ninp, nout):
    """Deterministic PyTorch-style (uniform +-1/sqrt(fan_in)) init.

    Weights are stored as (in_features, out_features); biases as (1, out)."""
    dims = [(ninp, 400), (400, 50), (50, nout)]
    params = []
    keys = jax.random.split(key, 2 * len(dims))
    for i, (fin, fout) in enumerate(dims):
        bound = 1.0 / jnp.sqrt(jnp.float32(fin))
        w = jax.random.uniform(keys[2 * i], (fin, fout), jnp.float32, -bound, bound)
        b = jax.random.uniform(keys[2 * i + 1], (1, fout), jnp.float32, -bound, bound)
        params += [w, b]
    return tuple(params)


def prepare_params(params, w0_dtype=jnp.float32, tk_max=1024):
    """Zero-pad params to lane-aligned shapes (done once, outside the kernel).

    Set w0_dtype=jnp.bfloat16 to halve the dominant first-layer weight stream
    (use a looser tolerance vs the f32 reference in that case)."""
    w0, b0, w1, b1, w2, b2 = params
    ninp, h0 = w0.shape
    h1 = w1.shape[1]
    nout = w2.shape[1]

    ninp_p = _round_up(ninp, _LANE)
    tk = min(ninp_p, tk_max)
    ninp_p = _round_up(ninp_p, tk)          # make the K-tile evenly divide
    h0_p = _round_up(h0, _LANE)
    h1_p = _round_up(h1, _LANE)
    nout_p = _round_up(nout, _LANE)

    def pad2(a, r, c):
        return jnp.pad(a, ((0, r - a.shape[0]), (0, c - a.shape[1])))

    return (
        pad2(w0, ninp_p, h0_p).astype(w0_dtype),
        pad2(b0, 1, h0_p).astype(jnp.float32),
        pad2(w1, h0_p, h1_p).astype(jnp.float32),
        pad2(b1, 1, h1_p).astype(jnp.float32),
        pad2(w2, h1_p, nout_p).astype(jnp.float32),
        pad2(b2, 1, nout_p).astype(jnp.float32),
    )


def dnn_forward(x, padded_params, nout, tb_max=256, tk_max=1024):
    w0, b0, w1, b1, w2, b2 = padded_params
    B, ninp = x.shape
    ninp_p, h0_p = w0.shape
    h1_p = w1.shape[1]
    nout_p = w2.shape[1]

    tk = min(ninp_p, tk_max)
    tb = min(tb_max, _round_up(B, _SUBLANE))
    b_pad = _round_up(B, tb)

    x_p = jnp.pad(x.astype(jnp.float32),
                  ((0, b_pad - B), (0, ninp_p - ninp)))

    grid = (b_pad // tb, ninp_p // tk)

    # Right-sized VMEM budget from actual buffer footprint (+ headroom).
    w0_item = jnp.dtype(w0.dtype).itemsize
    need = (
        2 * tb * tk * 4                              # x tile, double-buffered
        + 2 * tk * h0_p * w0_item                    # W0 tile, double-buffered
        + 2 * tb * nout_p * 4                        # out tile, double-buffered
        + 2 * (h0_p * h1_p + h1_p * nout_p
               + h0_p + h1_p + nout_p) * 4           # resident weights/biases
        + tb * h0_p * 4                              # accumulator scratch
    )
    vmem_limit = int(min(max(need + (4 << 20), 24 << 20), 64 << 20))

    out = pl.pallas_call(
        functools.partial(dnn_kernel, nout),
        out_shape=jax.ShapeDtypeStruct((b_pad, nout_p), jnp.float32),
        grid=grid,
        in_specs=[
            pl.BlockSpec((tb, tk), lambda i, k: (i, k)),        # x
            pl.BlockSpec((tk, h0_p), lambda i, k: (k, 0)),      # W0
            pl.BlockSpec((1, h0_p), lambda i, k: (0, 0)),       # b0
            pl.BlockSpec((h0_p, h1_p), lambda i, k: (0, 0)),    # W1
            pl.BlockSpec((1, h1_p), lambda i, k: (0, 0)),       # b1
            pl.BlockSpec((h1_p, nout_p), lambda i, k: (0, 0)),  # W2
            pl.BlockSpec((1, nout_p), lambda i, k: (0, 0)),     # b2
        ],
        out_specs=pl.BlockSpec((tb, nout_p), lambda i, k: (i, 0)),
        scratch_shapes=[pltpu.VMEM((tb, h0_p), jnp.float32)],
        compiler_params=pltpu.CompilerParams(
            dimension_semantics=("parallel", "arbitrary"),
            vmem_limit_bytes=vmem_limit,
        ),
    )(x_p, w0, b0, w1, b1, w2, b2)

    return out[:B, :nout]


def reference_forward(x, params):
    w0, b0, w1, b1, w2, b2 = params
    h = jax.nn.sigmoid(x @ w0 + b0)
    h = jax.nn.sigmoid(h @ w1 + b1)
    return jax.nn.softmax(h @ w2 + b2, axis=-1)


if __name__ == "__main__":
    B, NINP, NOUT = 2, 32, 8

    key = jax.random.PRNGKey(0)
    kx, kp = jax.random.split(key)
    x = jax.random.normal(kx, (B, NINP), jnp.float32)
    params = init_params(kp, NINP, NOUT)

    padded = prepare_params(params)          # pad once, reuse across calls
    out = dnn_forward(x, padded, nout=NOUT)
    out = jax.block_until_ready(out)

    ref = reference_forward(x, params)
    assert out.shape == (B, NOUT)
    assert jnp.allclose(out, ref, atol=1e-3, rtol=1e-3), "mismatch vs pure-JAX reference"
    assert jnp.allclose(jnp.sum(out, axis=-1), 1.0, atol=1e-3), "softmax rows must sum to 1"

    print("KERNEL_OK")
</pallas_src>

<mosaic_0001>
module attributes {stable_mosaic.version = 11 : i64} {
  func.func @dnn_kernel(%arg0: i32, %arg1: i32, %arg2: memref<8x128xf32, #tpu.memory_space<vmem>>, %arg3: memref<128x512xf32, #tpu.memory_space<vmem>>, %arg4: memref<1x512xf32, #tpu.memory_space<vmem>>, %arg5: memref<512x128xf32, #tpu.memory_space<vmem>>, %arg6: memref<1x128xf32, #tpu.memory_space<vmem>>, %arg7: memref<128x128xf32, #tpu.memory_space<vmem>>, %arg8: memref<1x128xf32, #tpu.memory_space<vmem>>, %arg9: memref<8x128xf32, #tpu.memory_space<vmem>>, %arg10: memref<8x512xf32, #tpu.memory_space<vmem>>) attributes {dimension_semantics = [#tpu.dimension_semantics<parallel>, #tpu.dimension_semantics<arbitrary>], iteration_bounds = array<i64: 1, 1>, scalar_prefetch = 0 : i64, scratch_operands = 1 : i64, tpu.core_type = #tpu.core_type<tc>, window_params = [{transform_indices = @transform_0, window_bounds = array<i64: 8, 128>}, {transform_indices = @transform_1, window_bounds = array<i64: 128, 512>}, {pipeline_mode = #tpu.pipeline_mode<synchronous>, transform_indices = @transform_2, window_bounds = array<i64: 1, 512>}, {pipeline_mode = #tpu.pipeline_mode<synchronous>, transform_indices = @transform_3, window_bounds = array<i64: 512, 128>}, {pipeline_mode = #tpu.pipeline_mode<synchronous>, transform_indices = @transform_4, window_bounds = array<i64: 1, 128>}, {pipeline_mode = #tpu.pipeline_mode<synchronous>, transform_indices = @transform_5, window_bounds = array<i64: 128, 128>}, {pipeline_mode = #tpu.pipeline_mode<synchronous>, transform_indices = @transform_6, window_bounds = array<i64: 1, 128>}, {transform_indices = @transform_7, window_bounds = array<i64: 8, 128>}]} {
    %c0_i32 = arith.constant 0 : i32
    %0 = arith.cmpi eq, %arg1, %c0_i32 : i32
    %1 = arith.extui %0 : i1 to i32
    %c0_i32_0 = arith.constant 0 : i32
    %2 = arith.cmpi ne, %1, %c0_i32_0 : i32
    scf.if %2 {
      %cst_10 = arith.constant 0.000000e+00 : f32
      %12 = vector.broadcast %cst_10 : f32 to vector<8x512xf32>
      %c0_11 = arith.constant 0 : index
      %c0_12 = arith.constant 0 : index
      %13 = vector.load %arg10[%c0_11, %c0_12] : memref<8x512xf32, #tpu.memory_space<vmem>>, vector<8x512xf32>
      tpu.vector_store %arg10[%c0_11, %c0_12], %12 {strides = array<i32>} : memref<8x512xf32, #tpu.memory_space<vmem>>, vector<8x512xf32>,
    } else {
    }
    %c0 = arith.constant 0 : index
    %c0_1 = arith.constant 0 : index
    %3 = vector.load %arg10[%c0, %c0_1] : memref<8x512xf32, #tpu.memory_space<vmem>>, vector<8x512xf32>
    %c0_2 = arith.constant 0 : index
    %c0_3 = arith.constant 0 : index
    %4 = vector.load %arg2[%c0_2, %c0_3] : memref<8x128xf32, #tpu.memory_space<vmem>>, vector<8x128xf32>
    %c0_4 = arith.constant 0 : index
    %c0_5 = arith.constant 0 : index
    %5 = vector.load %arg3[%c0_4, %c0_5] : memref<128x512xf32, #tpu.memory_space<vmem>>, vector<128x512xf32>
    %cst = arith.constant dense<0.000000e+00> : vector<8x512xf32>
    %6 = tpu.matmul %4, %5, %cst {dimension_numbers = #tpu.dot_dimension_numbers<[1], [0], [0], [1], [0, 0, 1, 1], [], []>} : vector<8x128xf32>, vector<128x512xf32>, vector<8x512xf32> -> vector<8x512xf32>
    %7 = arith.addf %3, %6 : vector<8x512xf32>
    %c0_6 = arith.constant 0 : index
    %c0_7 = arith.constant 0 : index
    %8 = vector.load %arg10[%c0_6, %c0_7] : memref<8x512xf32, #tpu.memory_space<vmem>>, vector<8x512xf32>
    tpu.vector_store %arg10[%c0_6, %c0_7], %7 {strides = array<i32>} : memref<8x512xf32, #tpu.memory_space<vmem>>, vector<8x512xf32>,
    %c0_i32_8 = arith.constant 0 : i32
    %9 = arith.cmpi eq, %arg1, %c0_i32_8 : i32
    %10 = arith.extui %9 : i1 to i32
    %c0_i32_9 = arith.constant 0 : i32
    %11 = arith.cmpi ne, %10, %c0_i32_9 : i32
    scf.if %11 {
      %c0_10 = arith.constant 0 : index
      %c0_11 = arith.constant 0 : index
      %12 = vector.load %arg10[%c0_10, %c0_11] : memref<8x512xf32, #tpu.memory_space<vmem>>, vector<8x512xf32>
      %c0_12 = arith.constant 0 : index
      %c0_13 = arith.constant 0 : index
      %13 = vector.load %arg4[%c0_12, %c0_13] : memref<1x512xf32, #tpu.memory_space<vmem>>, vector<1x512xf32>
      %14 = vector.broadcast %13 : vector<1x512xf32> to vector<8x512xf32>
      %15 = arith.addf %12, %14 : vector<8x512xf32>
      %16 = arith.negf %15 : vector<8x512xf32>
      %17 = math.exp %16 : vector<8x512xf32>
      %cst_14 = arith.constant 1.000000e+00 : f32
      %18 = vector.broadcast %cst_14 : f32 to vector<8x512xf32>
      %19 = arith.addf %18, %17 : vector<8x512xf32>
      %20 = arith.divf %18, %19 : vector<8x512xf32>
      %c0_15 = arith.constant 0 : index
      %c0_16 = arith.constant 0 : index
      %21 = vector.load %arg5[%c0_15, %c0_16] : memref<512x128xf32, #tpu.memory_space<vmem>>, vector<512x128xf32>
      %cst_17 = arith.constant dense<0.000000e+00> : vector<8x128xf32>
      %22 = tpu.matmul %20, %21, %cst_17 {dimension_numbers = #tpu.dot_dimension_numbers<[1], [0], [0], [1], [0, 0, 1, 1], [], []>} : vector<8x512xf32>, vector<512x128xf32>, vector<8x128xf32> -> vector<8x128xf32>
      %c0_18 = arith.constant 0 : index
      %c0_19 = arith.constant 0 : index
      %23 = vector.load %arg6[%c0_18, %c0_19] : memref<1x128xf32, #tpu.memory_space<vmem>>, vector<1x128xf32>
      %24 = vector.broadcast %23 : vector<1x128xf32> to vector<8x128xf32>
      %25 = arith.addf %22, %24 : vector<8x128xf32>
      %26 = arith.negf %25 : vector<8x128xf32>
      %27 = math.exp %26 : vector<8x128xf32>
      %cst_20 = arith.constant 1.000000e+00 : f32
      %28 = vector.broadcast %cst_20 : f32 to vector<8x128xf32>
      %29 = arith.addf %28, %27 : vector<8x128xf32>
      %30 = arith.divf %28, %29 : vector<8x128xf32>
      %c0_21 = arith.constant 0 : index
      %c0_22 = arith.constant 0 : index
      %31 = vector.load %arg7[%c0_21, %c0_22] : memref<128x128xf32, #tpu.memory_space<vmem>>, vector<128x128xf32>
      %cst_23 = arith.constant dense<0.000000e+00> : vector<8x128xf32>
      %32 = tpu.matmul %30, %31, %cst_23 {dimension_numbers = #tpu.dot_dimension_numbers<[1], [0], [0], [1], [0, 0, 1, 1], [], []>} : vector<8x128xf32>, vector<128x128xf32>, vector<8x128xf32> -> vector<8x128xf32>
      %c0_24 = arith.constant 0 : index
      %c0_25 = arith.constant 0 : index
      %33 = vector.load %arg8[%c0_24, %c0_25] : memref<1x128xf32, #tpu.memory_space<vmem>>, vector<1x128xf32>
      %34 = vector.broadcast %33 : vector<1x128xf32> to vector<8x128xf32>
      %35 = arith.addf %32, %34 : vector<8x128xf32>
      %36 = tpu.iota {dimensions = array<i32: 1>} : vector<8x128xi32>
      %c8_i32 = arith.constant 8 : i32
      %37 = vector.broadcast %c8_i32 : i32 to vector<8x128xi32>
      %38 = arith.cmpi slt, %36, %37 : vector<8x128xi32>
      %cst_26 = arith.constant -1.000000e+30 : f32
      %39 = vector.broadcast %cst_26 : f32 to vector<8x128xf32>
      %40 = arith.select %38, %35, %39 : vector<8x128xi1>, vector<8x128xf32>
      %cst_27 = arith.constant dense<0xFF800000> : vector<8xf32>
      %41 = vector.multi_reduction <maximumf>, %40, %cst_27 [1] : vector<8x128xf32> to vector<8xf32>
      %42 = vector.shape_cast %41 : vector<8xf32> to vector<8x1xf32>
      %43 = vector.broadcast %42 : vector<8x1xf32> to vector<8x128xf32>
      %44 = arith.subf %40, %43 : vector<8x128xf32>
      %45 = math.exp %44 : vector<8x128xf32>
      %cst_28 = arith.constant dense<0.000000e+00> : vector<8xf32>
      %46 = vector.multi_reduction <add>, %45, %cst_28 [1] : vector<8x128xf32> to vector<8xf32>
      %47 = vector.shape_cast %46 : vector<8xf32> to vector<8x1xf32>
      %48 = vector.broadcast %47 : vector<8x1xf32> to vector<8x128xf32>
      %49 = arith.divf %45, %48 : vector<8x128xf32>
      %c0_29 = arith.constant 0 : index
      %c0_30 = arith.constant 0 : index
      %50 = vector.load %arg9[%c0_29, %c0_30] : memref<8x128xf32, #tpu.memory_space<vmem>>, vector<8x128xf32>
      tpu.vector_store %arg9[%c0_29, %c0_30], %49 {strides = array<i32>} : memref<8x128xf32, #tpu.memory_space<vmem>>, vector<8x128xf32>,
    } else {
    }
    return
  }
  func.func @transform_0(%arg0: i32, %arg1: i32) -> (i32, i32) {
    %c0_i32 = arith.constant 0 : i32
    return %arg0, %arg1 : i32, i32
  }
  func.func @transform_1(%arg0: i32, %arg1: i32) -> (i32, i32) {
    %c0_i32 = arith.constant 0 : i32
    %c0_i32_0 = arith.constant 0 : i32
    return %arg1, %c0_i32 : i32, i32
  }
  func.func @transform_2(%arg0: i32, %arg1: i32) -> (i32, i32) {
    %c0_i32 = arith.constant 0 : i32
    %c0_i32_0 = arith.constant 0 : i32
    %c0_i32_1 = arith.constant 0 : i32
    return %c0_i32, %c0_i32_0 : i32, i32
  }
  func.func @transform_3(%arg0: i32, %arg1: i32) -> (i32, i32) {
    %c0_i32 = arith.constant 0 : i32
    %c0_i32_0 = arith.constant 0 : i32
    %c0_i32_1 = arith.constant 0 : i32
    return %c0_i32, %c0_i32_0 : i32, i32
  }
  func.func @transform_4(%arg0: i32, %arg1: i32) -> (i32, i32) {
    %c0_i32 = arith.constant 0 : i32
    %c0_i32_0 = arith.constant 0 : i32
    %c0_i32_1 = arith.constant 0 : i32
    return %c0_i32, %c0_i32_0 : i32, i32
  }
  func.func @transform_5(%arg0: i32, %arg1: i32) -> (i32, i32) {
    %c0_i32 = arith.constant 0 : i32
    %c0_i32_0 = arith.constant 0 : i32
    %c0_i32_1 = arith.constant 0 : i32
    return %c0_i32, %c0_i32_0 : i32, i32
  }
  func.func @transform_6(%arg0: i32, %arg1: i32) -> (i32, i32) {
    %c0_i32 = arith.constant 0 : i32
    %c0_i32_0 = arith.constant 0 : i32
    %c0_i32_1 = arith.constant 0 : i32
    return %c0_i32, %c0_i32_0 : i32, i32
  }
  func.func @transform_7(%arg0: i32, %arg1: i32) -> (i32, i32) {
    %c0_i32 = arith.constant 0 : i32
    %c0_i32_0 = arith.constant 0 : i32
    return %arg0, %c0_i32 : i32, i32
  }
}

</mosaic_0001>

<bundles_post_ra>
// kernel: tpu_custom_call.1
= control target key start
LH: loop header
LB: loop body
LE: loop exit
PB: predicated region body
PF: predicated region fallthrough
CT: control target
= control target key end

     0   :  { %12 = vsyncpa [#allocation4], 0  ;;  %s1266_s0 = inlined_call_operand.hbm [shape: f32[8,128], index: 0, kind: input, shape index: {}]   ;;  %s1267_s1 = inlined_call_operand.hbm [shape: f32[128,512], index: 1, kind: input, shape index: {}]   ;;  %s1268_s2 = inlined_call_operand.vmem [shape: f32[1,512], index: 2, kind: input, shape index: {}]   ;;  %s1269_s3 = inlined_call_operand.hbm [shape: f32[512,128], index: 3, kind: input, shape index: {}]   ;;  %s1270_s4 = inlined_call_operand.vmem [shape: f32[1,128], index: 4, kind: input, shape index: {}]   ;;  %s1271_s5 = inlined_call_operand.hbm [shape: f32[128,128], index: 5, kind: input, shape index: {}]   ;;  %s1272_s6 = inlined_call_operand.vmem [shape: f32[1,128], index: 6, kind: input, shape index: {}]   ;;  %s1273_s7 = inlined_call_operand.hbm [shape: f32[8,128], index: 7, kind: output, shape index: {}]  }
   0x1   :  { %13 = vsyncpa [#allocation7], 0 }
   0x2   :  { %14 = vsyncpa [#allocation10], 0 }
   0x3   :  { %15 = vsyncpa [#allocation5], 0  ;;  %s1140_s24 = smov [#allocation6]   ;;  %s1022_s28 = scalar_lea.hbm %s1267_s1, 8192 }
   0x4   :  { %s31_s25 = sshll.u32 %s1140_s24, 4  ;;  %p1023_p0 = scmp.ne.s32.totalorder %s1267_s1, %s1022_s28  ;;  %s32_s25 = int_to_ptr.vmem [resolvable:$true] %s31_s25 }
   0x5   :  { %p1026_p1 = scmp.lt.u32.totalorder %s1022_s28, %s1267_s1 }
   0x7   :  { %p1028_p2 = pnand %p1026_p1, %p1023_p0 }
   0x9   :  { %1031 = shalt.err (!%p1028_p2)
}
   0xa   :  { %s1032_s10 = scalar_lea.vmem %s32_s25, 8192  ;;  %p1037_p4 = scmp.lt.s32.totalorder %s32_s25, %s32_s25 }
   0xb   :  { %p1033_p3 = scmp.ne.s32.totalorder %s32_s25, %s1032_s10  ;;  %p1038_p5 = scmp.lt.s32.totalorder %s1032_s10, %s1032_s10 }
   0xd   :  { %p1039_p6 = por %p1038_p5, %p1037_p4 }
   0xf   :  { %p1040_p7 = pnand %p1039_p6, %p1033_p3 }
  0x11   :  { %1043 = shalt.err (!%p1040_p7)
}
  0x12   :  { %s1141_s11 = smov 512   ;;  %s1142_s12 = smov 32  }
  0x13   :  { %37 = dma.hbm_to_vmem [thread:$0]  %s1267_s1, 8192, %s32_s25, [#allocation7], %s1141_s11, %s1141_s11, %s1142_s12  }
  0x14   :  { %s1143_s15 = smov [#allocation3]   ;;  %s1144_s17 = smov [#allocation8]  }
  0x15   :  { %s22_s16 = sshll.u32 %s1143_s15, 4  ;;  %s45_s18 = sshll.u32 %s1144_s17, 4  ;;  %s23_s16 = int_to_ptr.vmem [resolvable:$true] %s22_s16  ;;  %s46_s18 = int_to_ptr.vmem [resolvable:$true] %s45_s18 }
  0x16   :  { %s1044_s21 = scalar_lea.hbm %s1266_s0, 128 }
  0x17   :  { %p1045_p8 = scmp.ne.s32.totalorder %s1266_s0, %s1044_s21  ;;  %p1048_p9 = scmp.lt.u32.totalorder %s1044_s21, %s1266_s0 }
  0x19   :  { %p1050_p10 = pnand %p1048_p9, %p1045_p8 }
  0x1b   :  { %1053 = shalt.err (!%p1050_p10)
}
  0x1c   :  { %s1054_s1 = scalar_lea.vmem %s23_s16, 128  ;;  %p1059_p12 = scmp.lt.s32.totalorder %s23_s16, %s23_s16 }
  0x1d   :  { %p1055_p11 = scmp.ne.s32.totalorder %s23_s16, %s1054_s1  ;;  %p1060_p13 = scmp.lt.s32.totalorder %s1054_s1, %s1054_s1 }
  0x1f   :  { %p1061_p0 = por %p1060_p13, %p1059_p12 }
  0x21   :  { %p1062_p1 = pnand %p1061_p0, %p1055_p11 }
  0x23   :  { %1065 = shalt.err (!%p1062_p1)
}
  0x24   :  { %25 = dma.hbm_to_vmem [thread:$0]  %s1266_s0, 128, %s23_s16, [#allocation4]  }
  0x25   :  { %s1066_s30 = scalar_lea.hbm %s1269_s3, 8192 }
  0x26   :  { %p1067_p2 = scmp.ne.s32.totalorder %s1269_s3, %s1066_s30  ;;  %p1070_p3 = scmp.lt.u32.totalorder %s1066_s30, %s1269_s3 }
  0x28   :  { %p1072_p4 = pnand %p1070_p3, %p1067_p2 }
  0x2a   :  { %1075 = shalt.err (!%p1072_p4)
}
  0x2b   :  { %s1076_s12 = scalar_lea.vmem %s46_s18, 8192  ;;  %p1081_p6 = scmp.lt.s32.totalorder %s46_s18, %s46_s18 }
  0x2c   :  { %p1077_p5 = scmp.ne.s32.totalorder %s46_s18, %s1076_s12  ;;  %p1082_p7 = scmp.lt.s32.totalorder %s1076_s12, %s1076_s12 }
  0x2e   :  { %p1083_p8 = por %p1082_p7, %p1081_p6 }
  0x30   :  { %p1084_p9 = pnand %p1083_p8, %p1077_p5 }
  0x32   :  { %1087 = shalt.err (!%p1084_p9)
}
  0x33   :  { %s1145_s0 = smov 128   ;;  %s1146_s13 = smov 8  }
  0x34   :  { %51 = dma.hbm_to_vmem [thread:$0]  %s1269_s3, 8192, %s46_s18, [#allocation7], %s1145_s0, %s1145_s0, %s1146_s13  }
  0x35   :  { %s1147_s16 = smov [#allocation9]   ;;  %s1088_s21 = scalar_lea.hbm %s1271_s5, 2048 }
  0x36   :  { %s59_s17 = sshll.u32 %s1147_s16, 4  ;;  %p1089_p10 = scmp.ne.s32.totalorder %s1271_s5, %s1088_s21  ;;  %s60_s17 = int_to_ptr.vmem [resolvable:$true] %s59_s17 }
  0x37   :  { %p1092_p11 = scmp.lt.u32.totalorder %s1088_s21, %s1271_s5 }
  0x39   :  { %p1094_p12 = pnand %p1092_p11, %p1089_p10 }
  0x3b   :  { %1097 = shalt.err (!%p1094_p12)
}
  0x3c   :  { %s1098_s1 = scalar_lea.vmem %s60_s17, 2048  ;;  %p1103_p0 = scmp.lt.s32.totalorder %s60_s17, %s60_s17 }
  0x3d   :  { %p1099_p13 = scmp.ne.s32.totalorder %s60_s17, %s1098_s1  ;;  %p1104_p1 = scmp.lt.s32.totalorder %s1098_s1, %s1098_s1 }
  0x3f   :  { %p1105_p2 = por %p1104_p1, %p1103_p0 }
  0x41   :  { %p1106_p3 = pnand %p1105_p2, %p1099_p13 }
  0x43   :  { %1109 = shalt.err (!%p1106_p3)
}
  0x44   :  { %65 = dma.hbm_to_vmem [thread:$0]  %s1271_s5, 2048, %s60_s17, [#allocation10], %s1145_s0, %s1145_s0, %s1146_s13  }
  0x45   :  { %1132 = dma.done.wait [#allocation4], 128  }
  0x46   :  { %1133 = vsyncadd [#allocation4], 4294967168 }
  0x47   :  { %1134 = dma.done.wait [#allocation7], 16384  }
  0x48   :  { %1135 = vsyncadd [#allocation7], 4294950912 }
  0x49   :  { %1136 = dma.done.wait [#allocation10], 2048  }
  0x4a   :  { %1137 = vsyncadd [#allocation10], 4294965248  ;;  %v1148_v0 = vmov 0.0   ;;  %v94_v1 = vld [vmem:[#allocation6 + $0x8] sm:$0xff]  ;;  %v96_v3 = vld [vmem:[#allocation6 + $0x18] sm:$0xff]  ;;  %vm1150_vm0 = vmmov 0  }
  0x4b   :  { %221 = vmatprep.mubr.f32.mxu0 %v1148_v0  ;;  %292 = vmatprep.mubr.f32.mxu1 %v1148_v0  ;;  %v98_v2 = vld [vmem:[#allocation6 + $0x28] sm:$0xff]  ;;  %v100_v5 = vld [vmem:[#allocation6 + $0x38] sm:$0xff]  ;;  %v93_v6 = vld [vmem:[#allocation6] sm:$0xff] }
  0x4c   :  { %v834_v4 = vpack.c.bf16 %v98_v2, %v94_v1  ;;  %v97_v7 = vld [vmem:[#allocation6 + $0x20] sm:$0xff]  ;;  %v866_v8 = vpack.c.bf16 %v100_v5, %v96_v3  ;;  %v95_v10 = vld [vmem:[#allocation6 + $0x10] sm:$0xff]  ;;  %v102_v12 = vld [vmem:[#allocation6 + $0x48] sm:$0xff] }
  0x4d   :  { %v836_v9 = vpack.c.bf16 %v97_v7, %v93_v6  ;;  %v99_v11 = vld [vmem:[#allocation6 + $0x30] sm:$0xff]  ;;  %v106_v14 = vld [vmem:[#allocation6 + $0x68] sm:$0xff]  ;;  %v104_v15 = vld [vmem:[#allocation6 + $0x58] sm:$0xff] }
  0x4e   :  { %835 = vmatprep.subr.bf16.mxu0 %v834_v4  ;;  %v868_v13 = vpack.c.bf16 %v99_v11, %v95_v10  ;;  %v108_v16 = vld [vmem:[#allocation6 + $0x78] sm:$0xff]  ;;  %867 = vmatprep.subr.bf16.mxu1 %v866_v8  ;;  %v838_v17 = vpack.c.bf16 %v106_v14, %v102_v12  ;;  %v101_v19 = vld [vmem:[#allocation6 + $0x40] sm:$0xff]  ;;  %v103_v21 = vld [vmem:[#allocation6 + $0x50] sm:$0xff] }
  0x4f   :  { %837 = vmatpush1.bf16.msra.mxu0 %v836_v9  ;;  %v870_v18 = vpack.c.bf16 %v108_v16, %v104_v15  ;;  %v105_v20 = vld [vmem:[#allocation6 + $0x60] sm:$0xff]  ;;  %v107_v23 = vld [vmem:[#allocation6 + $0x70] sm:$0xff]  ;;  %v110_v24 = vld [vmem:[#allocation6 + $0x88] sm:$0xff] }
  0x50   :  { %869 = vmatpush1.bf16.msra.mxu1 %v868_v13  ;;  %v840_v22 = vpack.c.bf16 %v105_v20, %v101_v19  ;;  %v114_v25 = vld [vmem:[#allocation6 + $0xa8] sm:$0xff]  ;;  %839 = vmatprep.subr.bf16.mxu0 %v838_v17  ;;  %v872_v26 = vpack.c.bf16 %v107_v23, %v103_v21  ;;  %v112_v28 = vld [vmem:[#allocation6 + $0x98] sm:$0xff]  ;;  %v109_v30 = vld [vmem:[#allocation6 + $0x80] sm:$0xff] }
  0x51   :  { %871 = vmatprep.subr.bf16.mxu1 %v870_v18  ;;  %v842_v27 = vpack.c.bf16 %v114_v25, %v110_v24  ;;  %v116_v29 = vld [vmem:[#allocation6 + $0xb8] sm:$0xff]  ;;  %v113_v32 = vld [vmem:[#allocation6 + $0xa0] sm:$0xff]  ;;  %v111_v33 = vld [vmem:[#allocation6 + $0x90] sm:$0xff] }
  0x52   :  { %v874_v31 = vpack.c.bf16 %v116_v29, %v112_v28  ;;  %v115_v34 = vld [vmem:[#allocation6 + $0xb0] sm:$0xff]  ;;  %v844_v35 = vpack.c.bf16 %v113_v32, %v109_v30  ;;  %v118_v36 = vld [vmem:[#allocation6 + $0xc8] sm:$0xff]  ;;  %v120_v38 = vld [vmem:[#allocation6 + $0xd8] sm:$0xff] }
  0x53   :  { %841 = vmatpush1.bf16.msra.mxu0 %v840_v22  ;;  %v122_v37 = vld [vmem:[#allocation6 + $0xe8] sm:$0xff]  ;;  %v876_v39 = vpack.c.bf16 %v115_v34, %v111_v33  ;;  %v124_v41 = vld [vmem:[#allocation6 + $0xf8] sm:$0xff]  ;;  %v117_v42 = vld [vmem:[#allocation6 + $0xc0] sm:$0xff] }
  0x54   :  { %873 = vmatpush1.bf16.msra.mxu1 %v872_v26  ;;  %843 = vmatprep.subr.bf16.mxu0 %v842_v27  ;;  %v846_v40 = vpack.c.bf16 %v122_v37, %v118_v36  ;;  %v121_v43 = vld [vmem:[#allocation6 + $0xe0] sm:$0xff]  ;;  %v878_v44 = vpack.c.bf16 %v124_v41, %v120_v38  ;;  %v119_v45 = vld [vmem:[#allocation6 + $0xd0] sm:$0xff]  ;;  %v126_v47 = vld [vmem:[#allocation6 + $0x108] sm:$0xff] }
  0x55   :  { %875 = vmatprep.subr.bf16.mxu1 %v874_v31  ;;  %v123_v46 = vld [vmem:[#allocation6 + $0xf0] sm:$0xff]  ;;  %v130_v48 = vld [vmem:[#allocation6 + $0x128] sm:$0xff]  ;;  %v128_v49 = vld [vmem:[#allocation6 + $0x118] sm:$0xff]  ;;  %v848_v51 = vpack.c.bf16 %v121_v43, %v117_v42 }
  0x56   :  { %v132_v50 = vld [vmem:[#allocation6 + $0x138] sm:$0xff]  ;;  %v880_v52 = vpack.c.bf16 %v123_v46, %v119_v45  ;;  %v850_v53 = vpack.c.bf16 %v130_v48, %v126_v47  ;;  %v125_v54 = vld [vmem:[#allocation6 + $0x100] sm:$0xff]  ;;  %v127_v56 = vld [vmem:[#allocation6 + $0x110] sm:$0xff] }
  0x57   :  { %845 = vmatpush1.bf16.msra.mxu0 %v844_v35  ;;  %v129_v55 = vld [vmem:[#allocation6 + $0x120] sm:$0xff]  ;;  %v882_v57 = vpack.c.bf16 %v132_v50, %v128_v49  ;;  %v131_v58 = vld [vmem:[#allocation6 + $0x130] sm:$0xff]  ;;  %v134_v59 = vld [vmem:[#allocation6 + $0x148] sm:$0xff] }
  0x58   :  { %877 = vmatpush1.bf16.msra.mxu1 %v876_v39  ;;  %847 = vmatprep.subr.bf16.mxu0 %v846_v40  ;;  %v138_v60 = vld [vmem:[#allocation6 + $0x168] sm:$0xff]  ;;  %v136_v61 = vld [vmem:[#allocation6 + $0x158] sm:$0xff]  ;;  %v852_v63 = vpack.c.bf16 %v129_v55, %v125_v54  ;;  %v884_v1 = vpack.c.bf16 %v131_v58, %v127_v56  ;;  %v133_v3 = vld [vmem:[#allocation6 + $0x140] sm:$0xff] }
  0x59   :  { %879 = vmatprep.subr.bf16.mxu1 %v878_v44  ;;  %v140_v62 = vld [vmem:[#allocation6 + $0x178] sm:$0xff]  ;;  %v854_v2 = vpack.c.bf16 %v138_v60, %v134_v59  ;;  %v137_v4 = vld [vmem:[#allocation6 + $0x160] sm:$0xff]  ;;  %v135_v5 = vld [vmem:[#allocation6 + $0x150] sm:$0xff] }
  0x5a   :  { %v886_v6 = vpack.c.bf16 %v140_v62, %v136_v61  ;;  %v139_v7 = vld [vmem:[#allocation6 + $0x170] sm:$0xff]  ;;  %v142_v8 = vld [vmem:[#allocation6 + $0x188] sm:$0xff]  ;;  %v144_v10 = vld [vmem:[#allocation6 + $0x198] sm:$0xff]  ;;  %v856_v12 = vpack.c.bf16 %v137_v4, %v133_v3 }
  0x5b   :  { %849 = vmatpush1.bf16.msra.mxu0 %v848_v51  ;;  %v146_v9 = vld [vmem:[#allocation6 + $0x1a8] sm:$0xff]  ;;  %v148_v11 = vld [vmem:[#allocation6 + $0x1b8] sm:$0xff]  ;;  %v888_v13 = vpack.c.bf16 %v139_v7, %v135_v5  ;;  %v141_v15 = vld [vmem:[#allocation6 + $0x180] sm:$0xff] }
  0x5c   :  { %881 = vmatpush1.bf16.msra.mxu1 %v880_v52  ;;  %851 = vmatprep.subr.bf16.mxu0 %v850_v53  ;;  %v858_v14 = vpack.c.bf16 %v146_v9, %v142_v8  ;;  %v145_v16 = vld [vmem:[#allocation6 + $0x1a0] sm:$0xff]  ;;  %v143_v17 = vld [vmem:[#allocation6 + $0x190] sm:$0xff]  ;;  %v890_v18 = vpack.c.bf16 %v148_v11, %v144_v10  ;;  %v150_v20 = vld [vmem:[#allocation6 + $0x1c8] sm:$0xff] }
  0x5d   :  { %883 = vmatprep.subr.bf16.mxu1 %v882_v57  ;;  %v147_v19 = vld [vmem:[#allocation6 + $0x1b0] sm:$0xff]  ;;  %v154_v21 = vld [vmem:[#allocation6 + $0x1e8] sm:$0xff]  ;;  %v152_v22 = vld [vmem:[#allocation6 + $0x1d8] sm:$0xff]  ;;  %v860_v24 = vpack.c.bf16 %v145_v16, %v141_v15 }
  0x5e   :  { %v156_v23 = vld [vmem:[#allocation6 + $0x1f8] sm:$0xff]  ;;  %v892_v25 = vpack.c.bf16 %v147_v19, %v143_v17  ;;  %v862_v26 = vpack.c.bf16 %v154_v21, %v150_v20  ;;  %v149_v27 = vld [vmem:[#allocation6 + $0x1c0] sm:$0xff]  ;;  %v151_v29 = vld [vmem:[#allocation6 + $0x1d0] sm:$0xff] }
  0x5f   :  { %853 = vmatpush1.bf16.msra.mxu0 %v852_v63  ;;  %v153_v28 = vld [vmem:[#allocation6 + $0x1e0] sm:$0xff]  ;;  %v894_v30 = vpack.c.bf16 %v156_v23, %v152_v22  ;;  %v155_v31 = vld [vmem:[#allocation6 + $0x1f0] sm:$0xff]  ;;  %v381_v33 = vld [vmem:[#allocation8 + $0x88] sm:$0xff] }
  0x60   :  { %885 = vmatpush1.bf16.msra.mxu1 %v884_v1  ;;  %855 = vmatprep.subr.bf16.mxu0 %v854_v2  ;;  %v380_v32 = vld [vmem:[#allocation8 + $0x80] sm:$0xff]  ;;  %v413_v35 = vld [vmem:[#allocation8 + $0x188] sm:$0xff]  ;;  %v864_v36 = vpack.c.bf16 %v153_v28, %v149_v27  ;;  %v896_v37 = vpack.c.bf16 %v155_v31, %v151_v29  ;;  %v92_v40 = vld [vmem:[#allocation3] sm:$0xff] }
  0x61   :  { %887 = vmatprep.subr.bf16.mxu1 %v886_v6  ;;  %v412_v34 = vld [vmem:[#allocation8 + $0x180] sm:$0xff]  ;;  %v898_v38 = vpack.c.bf16 %v381_v33, %v380_v32  ;;  %v365_v42 = vld [vmem:[#allocation8 + $0x8] sm:$0xff]  ;;  %v382_v47 = vld [vmem:[#allocation8 + $0x90] sm:$0xff] }
  0x62   :  { %v930_v39 = vpack.c.bf16 %v413_v35, %v412_v34  ;;  %v364_v41 = vld [vmem:[#allocation8] sm:$0xff]  ;;  %v397_v45 = vld [vmem:[#allocation8 + $0x108] sm:$0xff]  ;;  %v383_v48 = vld [vmem:[#allocation8 + $0x98] sm:$0xff] }
  0x63   :  { %857 = vmatpush1.bf16.msra.mxu0 %v856_v12  ;;  %v396_v43 = vld [vmem:[#allocation8 + $0x100] sm:$0xff]  ;;  %v900_v44 = vpack.c.bf16 %v365_v42, %v364_v41  ;;  %v414_v49 = vld [vmem:[#allocation8 + $0x190] sm:$0xff]  ;;  %v902_v50 = vpack.c.bf16 %v383_v48, %v382_v47  ;;  %v415_v51 = vld [vmem:[#allocation8 + $0x198] sm:$0xff] }
  0x64   :  { %889 = vmatpush1.bf16.msra.mxu1 %v888_v13  ;;  %859 = vmatprep.subr.bf16.mxu0 %v858_v14  ;;  %v932_v46 = vpack.c.bf16 %v397_v45, %v396_v43  ;;  %v366_v52 = vld [vmem:[#allocation8 + $0x10] sm:$0xff]  ;;  %v367_v53 = vld [vmem:[#allocation8 + $0x18] sm:$0xff]  ;;  %v934_v54 = vpack.c.bf16 %v415_v51, %v414_v49  ;;  %v384_v59 = vld [vmem:[#allocation8 + $0xa0] sm:$0xff] }
  0x65   :  { %891 = vmatprep.subr.bf16.mxu1 %v890_v18  ;;  %v904_v55 = vpack.c.bf16 %v367_v53, %v366_v52  ;;  %v398_v56 = vld [vmem:[#allocation8 + $0x110] sm:$0xff]  ;;  %v399_v57 = vld [vmem:[#allocation8 + $0x118] sm:$0xff]  ;;  %v385_v60 = vld [vmem:[#allocation8 + $0xa8] sm:$0xff] }
  0x66   :  { %v936_v58 = vpack.c.bf16 %v399_v57, %v398_v56  ;;  %v416_v61 = vld [vmem:[#allocation8 + $0x1a0] sm:$0xff]  ;;  %v906_v62 = vpack.c.bf16 %v385_v60, %v384_v59  ;;  %v417_v63 = vld [vmem:[#allocation8 + $0x1a8] sm:$0xff]  ;;  %v386_v8 = vld [vmem:[#allocation8 + $0xb0] sm:$0xff] }
  0x67   :  { %861 = vmatpush1.bf16.msra.mxu0 %v860_v24  ;;  %v368_v1 = vld [vmem:[#allocation8 + $0x20] sm:$0xff]  ;;  %v369_v2 = vld [vmem:[#allocation8 + $0x28] sm:$0xff]  ;;  %v938_v3 = vpack.c.bf16 %v417_v63, %v416_v61  ;;  %v387_v9 = vld [vmem:[#allocation8 + $0xb8] sm:$0xff] }
  0x68   :  { %893 = vmatpush1.bf16.msra.mxu1 %v892_v25  ;;  %863 = vmatprep.subr.bf16.mxu0 %v862_v26  ;;  %v908_v4 = vpack.c.bf16 %v369_v2, %v368_v1  ;;  %v400_v5 = vld [vmem:[#allocation8 + $0x120] sm:$0xff]  ;;  %v401_v6 = vld [vmem:[#allocation8 + $0x128] sm:$0xff]  ;;  %v418_v10 = vld [vmem:[#allocation8 + $0x1b0] sm:$0xff]  ;;  %v910_v11 = vpack.c.bf16 %v387_v9, %v386_v8 }
  0x69   :  { %895 = vmatprep.subr.bf16.mxu1 %v894_v30  ;;  %v940_v7 = vpack.c.bf16 %v401_v6, %v400_v5  ;;  %v419_v12 = vld [vmem:[#allocation8 + $0x1b8] sm:$0xff]  ;;  %v370_v13 = vld [vmem:[#allocation8 + $0x30] sm:$0xff]  ;;  %v388_v20 = vld [vmem:[#allocation8 + $0xc0] sm:$0xff]  ;;  %v316_v5 = vlaneseq }
  0x6a   :  { %v371_v14 = vld [vmem:[#allocation8 + $0x38] sm:$0xff]  ;;  %v942_v15 = vpack.c.bf16 %v419_v12, %v418_v10  ;;  %v402_v17 = vld [vmem:[#allocation8 + $0x130] sm:$0xff]  ;;  %v389_v21 = vld [vmem:[#allocation8 + $0xc8] sm:$0xff] }
  0x6b   :  { %865 = vmatpush1.bf16.msra.mxu0 %v864_v36  ;;  %v912_v16 = vpack.c.bf16 %v371_v14, %v370_v13  ;;  %v403_v18 = vld [vmem:[#allocation8 + $0x138] sm:$0xff]  ;;  %v420_v22 = vld [vmem:[#allocation8 + $0x1c0] sm:$0xff]  ;;  %v914_v23 = vpack.c.bf16 %v389_v21, %v388_v20  ;;  %v421_v24 = vld [vmem:[#allocation8 + $0x1c8] sm:$0xff]  ;;  %v317_v6 = vshrl.u32 %v316_v5, 7 }
  0x6c   :  { %897 = vmatpush1.bf16.msra.mxu1 %v896_v37  ;;  %899 = vmatprep.subr.bf16.mxu0 %v898_v38  ;;  %v944_v19 = vpack.c.bf16 %v403_v18, %v402_v17  ;;  %v372_v25 = vld [vmem:[#allocation8 + $0x40] sm:$0xff]  ;;  %v373_v26 = vld [vmem:[#allocation8 + $0x48] sm:$0xff]  ;;  %v946_v27 = vpack.c.bf16 %v421_v24, %v420_v22  ;;  %v390_v32 = vld [vmem:[#allocation8 + $0xd0] sm:$0xff] }
  0x6d   :  { %931 = vmatprep.subr.bf16.mxu1 %v930_v39  ;;  %v916_v28 = vpack.c.bf16 %v373_v26, %v372_v25  ;;  %v404_v29 = vld [vmem:[#allocation8 + $0x140] sm:$0xff]  ;;  %v405_v30 = vld [vmem:[#allocation8 + $0x148] sm:$0xff]  ;;  %v391_v33 = vld [vmem:[#allocation8 + $0xd8] sm:$0xff]  ;;  %v326_v9 = vsub.s32 2, %v317_v6  ;;  %v322_v10 = vsub.s32 1, %v317_v6 }
  0x6e   :  { %222 = vmatmul.mubr.f32.vlgmr.msra.gmra.mrb[0].mxu0 %v92_v40  ;;  %v948_v31 = vpack.c.bf16 %v405_v30, %v404_v29  ;;  %v422_v34 = vld [vmem:[#allocation8 + $0x1d0] sm:$0xff]  ;;  %v918_v35 = vpack.c.bf16 %v391_v33, %v390_v32  ;;  %v423_v36 = vld [vmem:[#allocation8 + $0x1d8] sm:$0xff]  ;;  %v393_v45 = vld [vmem:[#allocation8 + $0xe8] sm:$0xff] }
  0x6f   :  { %293 = vmatmul.mubr.f32.vlgmr.msra.gmra.mrb[0].mxu1 %v92_v40  ;;  %901 = vmatpush3.bf16.msra.mxu0 %v900_v44  ;;  %v374_v37 = vld [vmem:[#allocation8 + $0x50] sm:$0xff]  ;;  %v375_v38 = vld [vmem:[#allocation8 + $0x58] sm:$0xff]  ;;  %v950_v39 = vpack.c.bf16 %v423_v36, %v422_v34  ;;  %v392_v44 = vld [vmem:[#allocation8 + $0xe0] sm:$0xff] }
  0x70   :  { %933 = vmatpush3.bf16.msra.mxu1 %v932_v46  ;;  %903 = vmatprep.subr.bf16.mxu0 %v902_v50  ;;  %v920_v40 = vpack.c.bf16 %v375_v38, %v374_v37  ;;  %v406_v41 = vld [vmem:[#allocation8 + $0x150] sm:$0xff]  ;;  %v407_v42 = vld [vmem:[#allocation8 + $0x158] sm:$0xff]  ;;  %v424_v46 = vld [vmem:[#allocation8 + $0x1e0] sm:$0xff]  ;;  %v922_v47 = vpack.c.bf16 %v393_v45, %v392_v44 }
  0x71   :  { %935 = vmatprep.subr.bf16.mxu1 %v934_v54  ;;  %v952_v43 = vpack.c.bf16 %v407_v42, %v406_v41  ;;  %v425_v48 = vld [vmem:[#allocation8 + $0x1e8] sm:$0xff]  ;;  %v376_v49 = vld [vmem:[#allocation8 + $0x60] sm:$0xff]  ;;  %v395_v57 = vld [vmem:[#allocation8 + $0xf8] sm:$0xff] }
  0x72   :  { %v377_v50 = vld [vmem:[#allocation8 + $0x68] sm:$0xff]  ;;  %v954_v51 = vpack.c.bf16 %v425_v48, %v424_v46  ;;  %v408_v53 = vld [vmem:[#allocation8 + $0x160] sm:$0xff]  ;;  %v427_v59 = vld [vmem:[#allocation8 + $0x1f8] sm:$0xff] }
  0x73   :  { %905 = vmatpush3.bf16.msra.mxu0 %v904_v55  ;;  %v924_v52 = vpack.c.bf16 %v377_v50, %v376_v49  ;;  %v409_v54 = vld [vmem:[#allocation8 + $0x168] sm:$0xff]  ;;  %v394_v55 = vld [vmem:[#allocation8 + $0xf0] sm:$0xff]  ;;  %v379_v63 = vld [vmem:[#allocation8 + $0x78] sm:$0xff] }
  0x74   :  { %937 = vmatpush3.bf16.msra.mxu1 %v936_v58  ;;  %907 = vmatprep.subr.bf16.mxu0 %v906_v62  ;;  %v956_v56 = vpack.c.bf16 %v409_v54, %v408_v53  ;;  %v426_v58 = vld [vmem:[#allocation8 + $0x1f0] sm:$0xff]  ;;  %v926_v60 = vpack.c.bf16 %v395_v57, %v394_v55  ;;  %v314_v8 = vld [vmem:[%s1268_s2] sm:$0xf]  ;;  %v582_v41 = vld [vmem:[#allocation9 + $0x8] sm:$0xff] }
  0x75   :  { %939 = vmatprep.subr.bf16.mxu1 %v938_v3  ;;  %v958_v61 = vpack.c.bf16 %v427_v59, %v426_v58  ;;  %v378_v62 = vld [vmem:[#allocation8 + $0x70] sm:$0xff]  ;;  %v411_v3 = vld [vmem:[#allocation8 + $0x178] sm:$0xff]  ;;  %v327_v13 = vrot.slane %v314_v8, %v326_v9  ;;  %v323_v14 = vrot.slane %v314_v8, %v322_v10  ;;  %v586_v48 = vld [vmem:[#allocation9 + $0x28] sm:$0xff] }
  0x76   :  { %v410_v1 = vld [vmem:[#allocation8 + $0x170] sm:$0xff]  ;;  %v928_v2 = vpack.c.bf16 %v379_v63, %v378_v62  ;;  %v584_v45 = vld [vmem:[#allocation9 + $0x18] sm:$0xff]  ;;  %v589_v53 = vld [vmem:[#allocation9 + $0x40] sm:$0xff] }
  0x77   :  { %909 = vmatpush3.bf16.msra.mxu0 %v908_v4  ;;  %v960_v4 = vpack.c.bf16 %v411_v3, %v410_v1  ;;  %v583_v44 = vld [vmem:[#allocation9 + $0x10] sm:$0xff]  ;;  %v590_v54 = vld [vmem:[#allocation9 + $0x48] sm:$0xff]  ;;  %v592_v57 = vld [vmem:[#allocation9 + $0x58] sm:$0xff] }
  0x78   :  { %941 = vmatpush3.bf16.msra.mxu1 %v940_v7  ;;  %911 = vmatprep.subr.bf16.mxu0 %v910_v11  ;;  %v318_v7 = vsub.s32 0, %v317_v6  ;;  %v330_v11 = vsub.s32 3, %v317_v6  ;;  %v966_v46 = vpack.c.bf16 %v584_v45, %v583_v44  ;;  %v587_v50 = vld [vmem:[#allocation9 + $0x30] sm:$0xff]  ;;  %v975_v55 = vpack.c.bf16 %v590_v54, %v589_v53  ;;  %v593_v59 = vld [vmem:[#allocation9 + $0x60] sm:$0xff]  ;;  %v596_v63 = vld [vmem:[#allocation9 + $0x78] sm:$0xff] }
  0x79   :  { %943 = vmatprep.subr.bf16.mxu1 %v942_v15  ;;  %v595_v62 = vld [vmem:[#allocation9 + $0x70] sm:$0xff] }
  0x7a   :  { %v319_v12 = vrot.slane %v314_v8, %v318_v7  ;;  %v331_v15 = vrot.slane %v314_v8, %v330_v11  ;;  %v984_v1 = vpack.c.bf16 %v596_v63, %v595_v62 }
  0x7b   :  { %913 = vmatpush3.bf16.msra.mxu0 %v912_v16 }
  0x7c   :  { %945 = vmatpush3.bf16.msra.mxu1 %v944_v19  ;;  %915 = vmatprep.subr.bf16.mxu0 %v914_v23 }
  0x7d   :  { %947 = vmatprep.subr.bf16.mxu1 %v946_v27 }
  0x7f   :  { %917 = vmatpush3.bf16.msra.mxu0 %v916_v28 }
  0x80   :  { %949 = vmatpush3.bf16.msra.mxu1 %v948_v31  ;;  %919 = vmatprep.subr.bf16.mxu0 %v918_v35 }
  0x81   :  { %951 = vmatprep.subr.bf16.mxu1 %v950_v39 }
  0x83   :  { %921 = vmatpush3.bf16.msra.mxu0 %v920_v40  ;;  %v581_v40 = vld [vmem:[#allocation9] sm:$0xff] }
  0x84   :  { %953 = vmatpush3.bf16.msra.mxu1 %v952_v43  ;;  %923 = vmatprep.subr.bf16.mxu0 %v922_v47  ;;  %v963_v42 = vpack.c.bf16 %v582_v41, %v581_v40  ;;  %v1149_v43 = vmov 0.0|0.0   ;;  %v585_v47 = vld [vmem:[#allocation9 + $0x20] sm:$0xff] }
  0x85   :  { %955 = vmatprep.subr.bf16.mxu1 %v954_v51  ;;  %v969_v49 = vpack.c.bf16 %v586_v48, %v585_v47  ;;  %v588_v51 = vld [vmem:[#allocation9 + $0x38] sm:$0xff] }
  0x87   :  { %925 = vmatpush3.bf16.msra.mxu0 %v924_v52  ;;  %v972_v52 = vpack.c.bf16 %v588_v51, %v587_v50 }
  0x88   :  { %957 = vmatpush3.bf16.msra.mxu1 %v956_v56  ;;  %927 = vmatprep.subr.bf16.mxu0 %v926_v60  ;;  %v591_v56 = vld [vmem:[#allocation9 + $0x50] sm:$0xff]  ;;  %v594_v60 = vld [vmem:[#allocation9 + $0x68] sm:$0xff] }
  0x89   :  { %959 = vmatprep.subr.bf16.mxu1 %v958_v61  ;;  %v978_v58 = vpack.c.bf16 %v592_v57, %v591_v56  ;;  %v981_v61 = vpack.c.bf16 %v594_v60, %v593_v59 }
  0x8b   :  { %929 = vmatpush3.bf16.msra.mxu0 %v928_v2 }
  0x8c   :  { %961 = vmatpush3.bf16.msra.mxu1 %v960_v4  ;;  %962 = vmatprep.subr.bf16.mxu0 %v1149_v43  ;;  %v709_v4 = vld [vmem:[%s1270_s4] ss:$0 sm:$0xff]  ;;  %s1151_s4 = smov [#allocation11]  }
  0x8d   :  { %s694_s30 = sshll.u32 %s1151_s4, 4  ;;  %s695_s30 = int_to_ptr.vmem [resolvable:$true] %s694_s30 }
  0x8e   :  { %p1115_p5 = scmp.lt.s32.totalorder %s695_s30, %s695_s30 }
 0x141   :  { %v223_v16 = vpop.f32.mrb[0].mxu0 }
 0x142   :  { %v336_v17 = vadd.f32 %v319_v12, %v223_v16  ;;  %v294_v18 = vpop.f32.mrb[0].mxu1  ;;  %v225_v19 = vpop.f32.mrb[1].mxu0  ;;  %v711_v16 = vld [vmem:[%s1272_s6] ss:$0 sm:$0xff]  ;;  %s1110_s6 = scalar_lea.vmem %s695_s30, 128 }
 0x143   :  { %v338_v20 = vadd.f32 %v327_v13, %v294_v18  ;;  %v337_v21 = vadd.f32 %v323_v14, %v225_v19  ;;  %v296_v22 = vpop.f32.mrb[1].mxu1  ;;  %p1111_p4 = scmp.ne.s32.totalorder %s695_s30, %s1110_s6  ;;  %p1116_p6 = scmp.lt.s32.totalorder %s1110_s6, %s1110_s6 }
 0x144   :  { %v705_v23 = vmul.f32 -1.442695, %v336_v17  ;;  %v339_v24 = vadd.f32 %v331_v15, %v296_v22  ;;  %v675_v15 = vand.u32 127, %v316_v5 }
 0x145   :  { %v707_v25 = vmul.f32 -1.442695, %v338_v20  ;;  %v706_v26 = vmul.f32 -1.442695, %v337_v21  ;;  %p1117_p7 = por %p1116_p6, %p1115_p5 }
 0x146   :  { %998 = vpow2.f32 %v705_v23  ;;  %v708_v27 = vmul.f32 -1.442695, %v339_v24  ;;  %vm676_vm1 = vcmp.lt.s32.totalorder %v675_v15, 8 }
 0x147   :  { %1000 = vpow2.f32 %v707_v25  ;;  %p1118_p8 = pnand %p1117_p7, %p1111_p4 }
 0x148   :  { %1002 = vpow2.f32 %v706_v26 }
 0x149   :  { %1004 = vpow2.f32 %v708_v27 }
 0x150   :  { %v999_v28 = vpop.eup %998 }
 0x151   :  { %v1001_v29 = vpop.eup %1000  ;;  %v352_v30 = vadd.f32 1.0, %v999_v28 }
 0x152   :  { %v1003_v31 = vpop.eup %1002  ;;  %v354_v32 = vadd.f32 1.0, %v1001_v29 }
 0x153   :  { %v1005_v33 = vpop.eup %1004  ;;  %1006 = vrcp.f32 %v352_v30  ;;  %v353_v34 = vadd.f32 1.0, %v1003_v31 }
 0x154   :  { %1008 = vrcp.f32 %v354_v32  ;;  %v355_v35 = vadd.f32 1.0, %v1005_v33 }
 0x155   :  { %1010 = vrcp.f32 %v353_v34 }
 0x156   :  { %1012 = vrcp.f32 %v355_v35 }
 0x15d   :  { %v1007_v36 = vpop.eup %1006 }
 0x15e   :  { %v1009_v37 = vpop.eup %1008 }
 0x15f   :  { %v1011_v38 = vpop.eup %1010 }
 0x160   :  { %v1013_v39 = vpop.eup %1012  ;;  %499 = vmatprep.mubr.f32.mxu0 %v1011_v38 }
 0x161   :  { %569 = vmatprep.mubr.f32.mxu1 %v1013_v39  ;;  %500 = vmatmul.mubr.f32.vlgmr.msra.gmra.mrb[2].mxu0 %v1007_v36 }
 0x162   :  { %570 = vmatmul.mubr.f32.vlgmr.msra.gmra.mrb[2].mxu1 %v1009_v37  ;;  %964 = vmatpush3.bf16.msra.mxu0 %v963_v42 }
 0x163   :  { %965 = vmatprep.subr.bf16.mxu0 %v1149_v43  ;;  %831 = vmatprep.mubr.msk.f32.mxu0 %vm1150_vm0, %v1148_v0 }
 0x166   :  { %967 = vmatpush3.bf16.msra.mxu0 %v966_v46 }
 0x167   :  { %968 = vmatprep.subr.bf16.mxu0 %v1149_v43 }
 0x16a   :  { %970 = vmatpush3.bf16.msra.mxu0 %v969_v49 }
 0x16b   :  { %971 = vmatprep.subr.bf16.mxu0 %v1149_v43 }
 0x16e   :  { %973 = vmatpush3.bf16.msra.mxu0 %v972_v52 }
 0x16f   :  { %974 = vmatprep.subr.bf16.mxu0 %v1149_v43 }
 0x172   :  { %976 = vmatpush3.bf16.msra.mxu0 %v975_v55 }
 0x173   :  { %977 = vmatprep.subr.bf16.mxu0 %v1149_v43 }
 0x176   :  { %979 = vmatpush3.bf16.msra.mxu0 %v978_v58 }
 0x177   :  { %980 = vmatprep.subr.bf16.mxu0 %v1149_v43 }
 0x17a   :  { %982 = vmatpush3.bf16.msra.mxu0 %v981_v61 }
 0x17b   :  { %983 = vmatprep.subr.bf16.mxu0 %v1149_v43 }
 0x17e   :  { %985 = vmatpush3.bf16.msra.mxu0 %v984_v1 }
 0x234   :  { %v744_v2 = vpop.f32.mrb[2].mxu0 }
 0x235   :  { %v779_v3 = vpop.f32.mrb[2].mxu1  ;;  %v745_v6 = vpop.f32.mrb[3].mxu0 }
 0x236   :  { %v746_v7 = vadd.f32 %v745_v6, %v744_v2  ;;  %v780_v8 = vpop.f32.mrb[3].mxu1 }
 0x237   :  { %v781_v9 = vadd.f32 %v780_v8, %v779_v3 }
 0x238   :  { %v502_v10 = vadd.f32 %v746_v7, %v709_v4 }
 0x23a   :  { %v572_v11 = vadd.f32 %v781_v9, %v502_v10 }
 0x23c   :  { %v710_v0 = vmul.f32 -1.442695, %v572_v11 }
 0x23e   :  { %1014 = vpow2.f32 %v710_v0 }
 0x248   :  { %v1015_v12 = vpop.eup %1014 }
 0x249   :  { %v578_v13 = vadd.f32 1.0, %v1015_v12 }
 0x24b   :  { %1016 = vrcp.f32 %v578_v13 }
 0x255   :  { %v1017_v14 = vpop.eup %1016 }
 0x256   :  { %832 = vmatmul.mubr.f32.vlgmr.msra.gmra.mrb[4].mxu0 %v1017_v14 }
 0x329   :  { %v670_v17 = vpop.f32.mrb[4].mxu0 }
 0x32a   :  { %v671_v18 = vadd.f32 %v711_v16, %v670_v17  ;;  %v833_v19 = vpop.f32.mrb[5].mxu0 }
 0x32c   :  { %v677_v20 = vsel %vm676_vm1, %v671_v18, -1e+30 }
 0x32d   :  { %678 = vmax.xlane.f32.xlu0 %v677_v20 }
 0x3ba   :  { %v679_v21 = vpop.xlane.xlu0 %678 }
 0x3bb   :  { %v680_v22 = vsub.f32 %v677_v20, %v679_v21 }
 0x3bd   :  { %v681_v23 = vmul.f32 1.442695, %v680_v22 }
 0x3bf   :  { %1018 = vpow2.f32 %v681_v23 }
 0x3c9   :  { %v1019_v24 = vpop.eup %1018 }
 0x3ca   :  { %683 = vadd.xlane.f32.xlu0 %v1019_v24 }
 0x457   :  { %v684_v25 = vpop.xlane.xlu0 %683 }
 0x458   :  { %1020 = vrcp.f32 %v684_v25 }
 0x462   :  { %v1021_v5 = vpop.eup %1020 }
 0x463   :  { %v686_v26 = vmul.f32 %v1021_v5, %v1019_v24 }
 0x465   :  { %687 = vst [vmem:[#allocation11] sm:$0xff] %v686_v26 }
 0x466   :  { %1121 = shalt.err (!%p1118_p8)
}
 0x467   :  { %s1122_s10 = scalar_lea.hbm %s1273_s7, 128 }
 0x468   :  { %p1123_p9 = scmp.ne.s32.totalorder %s1273_s7, %s1122_s10  ;;  %p1126_p10 = scmp.lt.u32.totalorder %s1122_s10, %s1273_s7 }
 0x46a   :  { %p1128_p11 = pnand %p1126_p10, %p1123_p9 }
 0x46c   :  { %1131 = shalt.err (!%p1128_p11)
}
 0x46d   :  { %697 = dma.vmem_to_hbm [thread:$0]  %s695_s30, 128, %s1273_s7, [#allocation5]  }
 0x46e   :  { %1138 = dma.done.wait [#allocation5], 128  }
 0x46f   :  { %1139 = vsyncadd [#allocation5], 4294967168 }
 0x470   :  { %701 = vsyncpa [#allocation4], 1 }
 0x471   :  { %702 = vsyncpa [#allocation7], 1 }
 0x472   :  { %703 = vsyncpa [#allocation10], 1 }
 0x473   :  { %704 = vsyncpa [#allocation5], 1 }

</bundles_post_ra>
